<compile_context>
chip_gen: v7x
topology: tpu7x:2x2x1
jax: 0.10.0
libtpu: 0.0.40
codegen_flags: <defaults>
</compile_context>

<pallas_src>
import jax
import jax.numpy as jnp
from jax.experimental import pallas as pl
from jax.experimental.pallas import tpu as pltpu


def mlp_kernel(x_ref, w1_ref, b1_ref, w2_ref, b2_ref, w3_ref, b3_ref, o_ref):
    # fc1: bf16 MXU matmul, f32 accumulate; bias + ReLU on the VPU in f32.
    x_bf = x_ref[...].astype(jnp.bfloat16)          # cast in-kernel (free, VPU)
    h1 = jnp.dot(x_bf, w1_ref[...], preferred_element_type=jnp.float32)
    h1 = jnp.maximum(h1 + b1_ref[...], 0.0)
    # fc2 (hidden2 zero-padded to 128 lanes -> lane-dense intermediate).
    h2 = jnp.dot(h1.astype(jnp.bfloat16), w2_ref[...],
                 preferred_element_type=jnp.float32)
    h2 = jnp.maximum(h2 + b2_ref[...], 0.0)
    # fc3: true output width (16); padded h2 columns are exactly zero, and the
    # padded K-rows of w3 are zero, so results match the unpadded math.
    out = jnp.dot(h2.astype(jnp.bfloat16), w3_ref[...],
                  preferred_element_type=jnp.float32)
    o_ref[...] = (out + b3_ref[...]).astype(o_ref.dtype)


def mlp_forward(x, w1, b1, w2, b2, w3, b3, *, tile_b=512):
    B, D_in = x.shape
    H1 = w1.shape[1]          # 256
    H2 = w2.shape[1]          # 64
    D_out = w3.shape[1]       # 16
    H2_P = 128                # lane-padded hidden2

    # --- zero-pad hidden2 feature dim to 128 lanes (weights only, tiny) -----
    w2_p = jnp.zeros((H1, H2_P), w2.dtype).at[:, :H2].set(w2)
    b2_p = jnp.zeros((1, H2_P), b2.dtype).at[:, :H2].set(b2)
    w3_p = jnp.zeros((H2_P, D_out), w3.dtype).at[:H2, :].set(w3)

    # --- bf16 MXU weights, f32 biases (all tiny, VMEM-resident) -------------
    w1_bf = w1.astype(jnp.bfloat16)
    w2_bf = w2_p.astype(jnp.bfloat16)
    w3_bf = w3_p.astype(jnp.bfloat16)
    b1_f = b1.astype(jnp.float32)
    b2_f = b2_p.astype(jnp.float32)
    b3_f = b3.astype(jnp.float32)

    # --- batch tiling: adapt tile to small batches, pad only if ragged ------
    tb = min(tile_b, max(8, ((B + 7) // 8) * 8))
    n_tiles = pl.cdiv(B, tb)
    B_pad = n_tiles * tb
    x_in = x.astype(jnp.float32)
    if B_pad != B:
        x_in = jnp.zeros((B_pad, D_in), jnp.float32).at[:B].set(x_in)

    resident = lambda a: pl.BlockSpec(a.shape, lambda i: (0, 0))

    out = pl.pallas_call(
        mlp_kernel,
        out_shape=jax.ShapeDtypeStruct((B_pad, D_out), jnp.float32),
        grid=(n_tiles,),
        in_specs=[
            pl.BlockSpec((tb, D_in), lambda i: (i, 0)),   # x tile (f32)
            resident(w1_bf), resident(b1_f),
            resident(w2_bf), resident(b2_f),
            resident(w3_bf), resident(b3_f),
        ],
        out_specs=pl.BlockSpec((tb, D_out), lambda i: (i, 0)),
        compiler_params=pltpu.CompilerParams(
            dimension_semantics=("parallel",)),
    )(x_in, w1_bf, b1_f, w2_bf, b2_f, w3_bf, b3_f)

    if B_pad != B:
        out = out[:B]
    return out


def init_params(key, input_dim, output_dim):
    # Deterministic synthetic init (PyTorch-Linear-like uniform fan-in scaling).
    ks = jax.random.split(key, 6)

    def linear(kw, kb, fan_in, fan_out):
        bound = 1.0 / (fan_in ** 0.5)
        w = jax.random.uniform(kw, (fan_in, fan_out), jnp.float32, -bound, bound)
        b = jax.random.uniform(kb, (1, fan_out), jnp.float32, -bound, bound)
        return w, b

    w1, b1 = linear(ks[0], ks[1], input_dim, 256)
    w2, b2 = linear(ks[2], ks[3], 256, 64)
    w3, b3 = linear(ks[4], ks[5], 64, output_dim)
    return w1, b1, w2, b2, w3, b3


def ref_forward_bf16(x, w1, b1, w2, b2, w3, b3):
    # Mirrors the kernel arithmetic (bf16 operands, f32 accumulation).
    f32 = jnp.float32
    bf = lambda a: a.astype(jnp.bfloat16).astype(f32)
    h1 = jnp.maximum(bf(x) @ bf(w1) + b1, 0.0)
    h2 = jnp.maximum(bf(h1) @ bf(w2) + b2, 0.0)
    return bf(h2) @ bf(w3) + b3


def ref_forward_f32(x, w1, b1, w2, b2, w3, b3):
    h1 = jnp.maximum(x @ w1 + b1, 0.0)
    h2 = jnp.maximum(h1 @ w2 + b2, 0.0)
    return h2 @ w3 + b3


if __name__ == "__main__":
    input_dim, output_dim, batch = 32, 16, 8

    key = jax.random.PRNGKey(0)
    kx, kp = jax.random.split(key)
    x = jax.random.normal(kx, (batch, input_dim), jnp.float32)
    params = init_params(kp, input_dim, output_dim)

    fwd = jax.jit(mlp_forward)
    out = fwd(x, *params)
    jax.block_until_ready(out)
    assert out.shape == (batch, output_dim)

    # Tight check vs a reference that mirrors the kernel's bf16/f32 math.
    ref_bf = ref_forward_bf16(x, *params)
    assert jnp.allclose(out, ref_bf, atol=1e-3, rtol=1e-3)

    # Loose semantic check vs the full-f32 PyTorch-equivalent forward.
    ref32 = ref_forward_f32(x, *params)
    assert jnp.allclose(out, ref32, atol=1e-1, rtol=1e-1)

    print("KERNEL_OK")
</pallas_src>

<mosaic_0001>
module attributes {stable_mosaic.version = 11 : i64} {
  func.func @mlp_kernel(%arg0: i32, %arg1: memref<8x32xf32, #tpu.memory_space<vmem>>, %arg2: memref<32x256xbf16, #tpu.memory_space<vmem>>, %arg3: memref<1x256xf32, #tpu.memory_space<vmem>>, %arg4: memref<256x128xbf16, #tpu.memory_space<vmem>>, %arg5: memref<1x128xf32, #tpu.memory_space<vmem>>, %arg6: memref<128x16xbf16, #tpu.memory_space<vmem>>, %arg7: memref<1x16xf32, #tpu.memory_space<vmem>>, %arg8: memref<8x16xf32, #tpu.memory_space<vmem>>) attributes {dimension_semantics = [#tpu.dimension_semantics<parallel>], iteration_bounds = array<i64: 1>, scalar_prefetch = 0 : i64, scratch_operands = 0 : i64, tpu.core_type = #tpu.core_type<tc>, window_params = [{transform_indices = @transform_0, window_bounds = array<i64: 8, 32>}, {pipeline_mode = #tpu.pipeline_mode<synchronous>, transform_indices = @transform_1, window_bounds = array<i64: 32, 256>}, {pipeline_mode = #tpu.pipeline_mode<synchronous>, transform_indices = @transform_2, window_bounds = array<i64: 1, 256>}, {pipeline_mode = #tpu.pipeline_mode<synchronous>, transform_indices = @transform_3, window_bounds = array<i64: 256, 128>}, {pipeline_mode = #tpu.pipeline_mode<synchronous>, transform_indices = @transform_4, window_bounds = array<i64: 1, 128>}, {pipeline_mode = #tpu.pipeline_mode<synchronous>, transform_indices = @transform_5, window_bounds = array<i64: 128, 16>}, {pipeline_mode = #tpu.pipeline_mode<synchronous>, transform_indices = @transform_6, window_bounds = array<i64: 1, 16>}, {transform_indices = @transform_7, window_bounds = array<i64: 8, 16>}]} {
    %c0 = arith.constant 0 : index
    %c0_0 = arith.constant 0 : index
    %0 = vector.load %arg1[%c0, %c0_0] : memref<8x32xf32, #tpu.memory_space<vmem>>, vector<8x32xf32>
    %1 = arith.truncf %0 : vector<8x32xf32> to vector<8x32xbf16>
    %c0_1 = arith.constant 0 : index
    %c0_2 = arith.constant 0 : index
    %2 = vector.load %arg2[%c0_1, %c0_2] : memref<32x256xbf16, #tpu.memory_space<vmem>>, vector<32x256xbf16>
    %cst = arith.constant dense<0.000000e+00> : vector<8x256xf32>
    %3 = tpu.matmul %1, %2, %cst {dimension_numbers = #tpu.dot_dimension_numbers<[1], [0], [0], [1], [0, 0, 1, 1], [], []>} : vector<8x32xbf16>, vector<32x256xbf16>, vector<8x256xf32> -> vector<8x256xf32>
    %c0_3 = arith.constant 0 : index
    %c0_4 = arith.constant 0 : index
    %4 = vector.load %arg3[%c0_3, %c0_4] : memref<1x256xf32, #tpu.memory_space<vmem>>, vector<1x256xf32>
    %5 = vector.broadcast %4 : vector<1x256xf32> to vector<8x256xf32>
    %6 = arith.addf %3, %5 : vector<8x256xf32>
    %cst_5 = arith.constant 0.000000e+00 : f32
    %7 = vector.broadcast %cst_5 : f32 to vector<8x256xf32>
    %8 = arith.maximumf %6, %7 : vector<8x256xf32>
    %9 = arith.truncf %8 : vector<8x256xf32> to vector<8x256xbf16>
    %c0_6 = arith.constant 0 : index
    %c0_7 = arith.constant 0 : index
    %10 = vector.load %arg4[%c0_6, %c0_7] : memref<256x128xbf16, #tpu.memory_space<vmem>>, vector<256x128xbf16>
    %cst_8 = arith.constant dense<0.000000e+00> : vector<8x128xf32>
    %11 = tpu.matmul %9, %10, %cst_8 {dimension_numbers = #tpu.dot_dimension_numbers<[1], [0], [0], [1], [0, 0, 1, 1], [], []>} : vector<8x256xbf16>, vector<256x128xbf16>, vector<8x128xf32> -> vector<8x128xf32>
    %c0_9 = arith.constant 0 : index
    %c0_10 = arith.constant 0 : index
    %12 = vector.load %arg5[%c0_9, %c0_10] : memref<1x128xf32, #tpu.memory_space<vmem>>, vector<1x128xf32>
    %13 = vector.broadcast %12 : vector<1x128xf32> to vector<8x128xf32>
    %14 = arith.addf %11, %13 : vector<8x128xf32>
    %cst_11 = arith.constant 0.000000e+00 : f32
    %15 = vector.broadcast %cst_11 : f32 to vector<8x128xf32>
    %16 = arith.maximumf %14, %15 : vector<8x128xf32>
    %17 = arith.truncf %16 : vector<8x128xf32> to vector<8x128xbf16>
    %c0_12 = arith.constant 0 : index
    %c0_13 = arith.constant 0 : index
    %18 = vector.load %arg6[%c0_12, %c0_13] : memref<128x16xbf16, #tpu.memory_space<vmem>>, vector<128x16xbf16>
    %cst_14 = arith.constant dense<0.000000e+00> : vector<8x16xf32>
    %19 = tpu.matmul %17, %18, %cst_14 {dimension_numbers = #tpu.dot_dimension_numbers<[1], [0], [0], [1], [0, 0, 1, 1], [], []>} : vector<8x128xbf16>, vector<128x16xbf16>, vector<8x16xf32> -> vector<8x16xf32>
    %c0_15 = arith.constant 0 : index
    %c0_16 = arith.constant 0 : index
    %20 = vector.load %arg7[%c0_15, %c0_16] : memref<1x16xf32, #tpu.memory_space<vmem>>, vector<1x16xf32>
    %21 = vector.broadcast %20 : vector<1x16xf32> to vector<8x16xf32>
    %22 = arith.addf %19, %21 : vector<8x16xf32>
    %c0_17 = arith.constant 0 : index
    %c0_18 = arith.constant 0 : index
    %23 = vector.load %arg8[%c0_17, %c0_18] : memref<8x16xf32, #tpu.memory_space<vmem>>, vector<8x16xf32>
    tpu.vector_store %arg8[%c0_17, %c0_18], %22 {strides = array<i32>} : memref<8x16xf32, #tpu.memory_space<vmem>>, vector<8x16xf32>,
    return
  }
  func.func @transform_0(%arg0: i32) -> (i32, i32) {
    %c0_i32 = arith.constant 0 : i32
    %c0_i32_0 = arith.constant 0 : i32
    return %arg0, %c0_i32 : i32, i32
  }
  func.func @transform_1(%arg0: i32) -> (i32, i32) {
    %c0_i32 = arith.constant 0 : i32
    %c0_i32_0 = arith.constant 0 : i32
    %c0_i32_1 = arith.constant 0 : i32
    return %c0_i32, %c0_i32_0 : i32, i32
  }
  func.func @transform_2(%arg0: i32) -> (i32, i32) {
    %c0_i32 = arith.constant 0 : i32
    %c0_i32_0 = arith.constant 0 : i32
    %c0_i32_1 = arith.constant 0 : i32
    return %c0_i32, %c0_i32_0 : i32, i32
  }
  func.func @transform_3(%arg0: i32) -> (i32, i32) {
    %c0_i32 = arith.constant 0 : i32
    %c0_i32_0 = arith.constant 0 : i32
    %c0_i32_1 = arith.constant 0 : i32
    return %c0_i32, %c0_i32_0 : i32, i32
  }
  func.func @transform_4(%arg0: i32) -> (i32, i32) {
    %c0_i32 = arith.constant 0 : i32
    %c0_i32_0 = arith.constant 0 : i32
    %c0_i32_1 = arith.constant 0 : i32
    return %c0_i32, %c0_i32_0 : i32, i32
  }
  func.func @transform_5(%arg0: i32) -> (i32, i32) {
    %c0_i32 = arith.constant 0 : i32
    %c0_i32_0 = arith.constant 0 : i32
    %c0_i32_1 = arith.constant 0 : i32
    return %c0_i32, %c0_i32_0 : i32, i32
  }
  func.func @transform_6(%arg0: i32) -> (i32, i32) {
    %c0_i32 = arith.constant 0 : i32
    %c0_i32_0 = arith.constant 0 : i32
    %c0_i32_1 = arith.constant 0 : i32
    return %c0_i32, %c0_i32_0 : i32, i32
  }
  func.func @transform_7(%arg0: i32) -> (i32, i32) {
    %c0_i32 = arith.constant 0 : i32
    %c0_i32_0 = arith.constant 0 : i32
    return %arg0, %c0_i32 : i32, i32
  }
}

</mosaic_0001>

<bundles_post_ra>
// kernel: mlp_forward.1
= control target key start
LH: loop header
LB: loop body
LE: loop exit
PB: predicated region body
PF: predicated region fallthrough
CT: control target
= control target key end

     0   :  { %v559_v2 = vmov 0   ;;  %vm66_vm0 = vcmask 261120   ;;  %s711_s0 = inlined_call_operand.vmem [shape: f32[8,32], index: 0, kind: input, shape index: {}]   ;;  %s712_s1 = inlined_call_operand.vmem [shape: bf16[32,256], index: 1, kind: input, shape index: {}]   ;;  %s713_s2 = inlined_call_operand.vmem [shape: f32[1,256], index: 2, kind: input, shape index: {}]   ;;  %s714_s3 = inlined_call_operand.vmem [shape: bf16[256,128], index: 3, kind: input, shape index: {}]   ;;  %s715_s4 = inlined_call_operand.vmem [shape: f32[1,128], index: 4, kind: input, shape index: {}]   ;;  %s716_s5 = inlined_call_operand.vmem [shape: bf16[128,16], index: 5, kind: input, shape index: {}]   ;;  %s717_s6 = inlined_call_operand.vmem [shape: f32[1,16], index: 6, kind: input, shape index: {}]   ;;  %s718_s7 = inlined_call_operand.hbm [shape: f32[8,16], index: 7, kind: output, shape index: {}]  }
   0x1   :  { %v505_v0 = vld [vmem:[%s712_s1 + $0x4] ss:$8 sps:$4 sm:$0xff]   ;;  %v507_v1 = vld [vmem:[%s712_s1] ss:$8 sps:$4 sm:$0xff]   ;;  %102 = vmatprep.mubr.bf16.mxu0 %v559_v2  ;;  %v508_v3 = vld [vmem:[%s712_s1 + $0x14] ss:$8 sps:$4 sm:$0xff]  }
   0x2   :  { %70 = vmatprep.subr.bf16.mxu0 %v505_v0  ;;  %v510_v4 = vld [vmem:[%s712_s1 + $0x10] ss:$8 sps:$4 sm:$0xff]   ;;  %v28_v5 = vld [vmem:[%s711_s0] sm:$0xff]  ;;  %v513_v8 = vld [vmem:[%s714_s3 + $0x48] sm:$0xff]  }
   0x3   :  { %71 = vmatpush1.bf16.msra.mxu0 %v507_v1  ;;  %v511_v6 = vld [vmem:[%s714_s3 + $0x40] sm:$0xff]   ;;  %v29_v9 = vpack.c.bf16 %v28_v5, %v28_v5  ;;  %v514_v10 = vld [vmem:[%s714_s3 + $0x8] sm:$0xff]   ;;  %v515_v11 = vld [vmem:[%s714_s3 + $0x50] sm:$0xff]  }
   0x4   :  { %72 = vmatprep.subr.bf16.mxu0 %v508_v3  ;;  %v512_v7 = vld [vmem:[%s714_s3] sm:$0xff]   ;;  %450 = vmatprep.subr.bf16.mxu1 %v511_v6  ;;  %v516_v12 = vld [vmem:[%s714_s3 + $0x10] sm:$0xff]   ;;  %v517_v13 = vld [vmem:[%s714_s3 + $0x58] sm:$0xff]  }
   0x5   :  { %451 = vmatpush3.bf16.msra.mxu1 %v512_v7  ;;  %v518_v14 = vld [vmem:[%s714_s3 + $0x18] sm:$0xff]   ;;  %v519_v15 = vld [vmem:[%s714_s3 + $0x60] sm:$0xff]   ;;  %v521_v17 = vld [vmem:[%s714_s3 + $0x68] sm:$0xff]  }
   0x6   :  { %452 = vmatprep.subr.bf16.mxu1 %v513_v8  ;;  %v520_v16 = vld [vmem:[%s714_s3 + $0x20] sm:$0xff]   ;;  %v522_v18 = vld [vmem:[%s714_s3 + $0x28] sm:$0xff]  }
   0x7   :  { %73 = vmatpush1.bf16.msra.mxu0 %v510_v4 }
   0x9   :  { %453 = vmatpush3.bf16.msra.mxu1 %v514_v10 }
   0xa   :  { %423 = vmatmul.mubr.msk.bf16.vlgmr.msra.gmra.mrb[0].mxu0 %vm66_vm0, %v29_v9  ;;  %454 = vmatprep.subr.bf16.mxu1 %v515_v11 }
   0xd   :  { %455 = vmatpush3.bf16.msra.mxu1 %v516_v12 }
   0xe   :  { %456 = vmatprep.subr.bf16.mxu1 %v517_v13 }
  0x11   :  { %457 = vmatpush3.bf16.msra.mxu1 %v518_v14 }
  0x12   :  { %458 = vmatprep.subr.bf16.mxu1 %v519_v15 }
  0x15   :  { %459 = vmatpush3.bf16.msra.mxu1 %v520_v16 }
  0x16   :  { %460 = vmatprep.subr.bf16.mxu1 %v521_v17 }
  0x17   :  { %12 = vsyncpa [#allocation3], 0  ;;  %v523_v19 = vld [vmem:[%s714_s3 + $0x70] sm:$0xff]   ;;  %v525_v21 = vld [vmem:[%s714_s3 + $0x78] sm:$0xff]   ;;  %v560_v24 = vmov 0.0   ;;  %v36_v30 = vlaneseq  ;;  %vm561_vm1 = vmmov 0  }
  0x18   :  { %v524_v20 = vld [vmem:[%s714_s3 + $0x30] sm:$0xff]   ;;  %v526_v22 = vld [vmem:[%s714_s3 + $0x38] sm:$0xff]   ;;  %v527_v23 = vld [vmem:[%s716_s5] sm:$0xff]   ;;  %481 = vmatprep.subr.bf16.mxu0 %v560_v24  ;;  %497 = vmatprep.mubr.msk.bf16.mxu0 %vm561_vm1, %v560_v24  ;;  %vm403_vm2 = vcmask 130048  }
  0x19   :  { %461 = vmatpush3.bf16.msra.mxu1 %v522_v18  ;;  %482 = vmatpush3.bf16.msra.mxu0 %v527_v23  ;;  %v528_v25 = vld [vmem:[%s716_s5 + $0x8] sm:$0xff]   ;;  %v529_v26 = vld [vmem:[%s716_s5 + $0x10] sm:$0xff]   ;;  %v530_v27 = vld [vmem:[%s716_s5 + $0x18] sm:$0xff]   ;;  %v37_v31 = vshrl.u32 %v36_v30, 7 }
  0x1a   :  { %462 = vmatprep.subr.bf16.mxu1 %v523_v19  ;;  %483 = vmatprep.subr.bf16.mxu0 %v560_v24  ;;  %v531_v28 = vld [vmem:[%s716_s5 + $0x20] sm:$0xff]   ;;  %v532_v29 = vld [vmem:[%s716_s5 + $0x28] sm:$0xff]   ;;  %v533_v47 = vld [vmem:[%s716_s5 + $0x30] sm:$0xff]  }
  0x1b   :  { %v38_v32 = vsub.s32 0, %v37_v31  ;;  %v34_v33 = vld [vmem:[%s713_s2] sm:$0x3]  ;;  %v42_v34 = vsub.s32 1, %v37_v31  ;;  %v534_v48 = vld [vmem:[%s716_s5 + $0x38] sm:$0xff]   ;;  %s562_s5 = smov [#allocation2]  }
  0x1c   :  { %v424_v50 = vld [vmem:[%s715_s4] ss:$0 sm:$0xff]  ;;  %s411_s13 = sshll.u32 %s562_s5, 4  ;;  %s412_s13 = int_to_ptr.vmem [resolvable:$true] %s411_s13 }
  0x1d   :  { %463 = vmatpush3.bf16.msra.mxu1 %v524_v20  ;;  %484 = vmatpush3.bf16.msra.mxu0 %v528_v25  ;;  %v39_v35 = vrot.slane %v34_v33, %v38_v32  ;;  %v43_v36 = vrot.slane %v34_v33, %v42_v34  ;;  %v441_v58 = vld [vmem:[%s717_s6] ss:$0 sm:$0xff]  ;;  %s535_s4 = scalar_lea.vmem %s412_s13, 128  ;;  %p540_p1 = scmp.lt.s32.totalorder %s412_s13, %s412_s13 }
  0x1e   :  { %464 = vmatprep.subr.bf16.mxu1 %v525_v21  ;;  %485 = vmatprep.subr.bf16.mxu0 %v560_v24  ;;  %p536_p0 = scmp.ne.s32.totalorder %s412_s13, %s535_s4  ;;  %p541_p2 = scmp.lt.s32.totalorder %s535_s4, %s535_s4 }
  0x20   :  { %p542_p3 = por %p541_p2, %p540_p1 }
  0x21   :  { %465 = vmatpush3.bf16.msra.mxu1 %v526_v22  ;;  %486 = vmatpush3.bf16.msra.mxu0 %v529_v26 }
  0x22   :  { %487 = vmatprep.subr.bf16.mxu0 %v560_v24  ;;  %p543_p4 = pnand %p542_p3, %p536_p0 }
  0x25   :  { %488 = vmatpush3.bf16.msra.mxu0 %v530_v27 }
  0x26   :  { %489 = vmatprep.subr.bf16.mxu0 %v560_v24 }
  0x29   :  { %490 = vmatpush3.bf16.msra.mxu0 %v531_v28 }
  0x2a   :  { %491 = vmatprep.subr.bf16.mxu0 %v560_v24 }
  0x2d   :  { %492 = vmatpush3.bf16.msra.mxu0 %v532_v29 }
  0x2e   :  { %493 = vmatprep.subr.bf16.mxu0 %v560_v24 }
  0x31   :  { %494 = vmatpush3.bf16.msra.mxu0 %v533_v47 }
  0x32   :  { %495 = vmatprep.subr.bf16.mxu0 %v560_v24 }
  0x35   :  { %496 = vmatpush3.bf16.msra.mxu0 %v534_v48 }
  0xdd   :  { %v104_v37 = vpop.f32.mrb[0].mxu0 }
  0xde   :  { %v105_v38 = vadd.f32 %v104_v37, %v39_v35  ;;  %v106_v39 = vpop.f32.mrb[1].mxu0 }
  0xdf   :  { %v107_v40 = vadd.f32 %v106_v39, %v43_v36  ;;  %v108_v41 = vpop.f32.mrb[2].mxu0 }
  0xe0   :  { %v111_v42 = vmax.f32 %v105_v38, 0.0  ;;  %v109_v43 = vpop.f32.mrb[3].mxu0 }
  0xe1   :  { %v112_v44 = vmax.f32 %v107_v40, 0.0 }
  0xe2   :  { %v113_v46 = vpack.c.bf16 %v111_v42, %v111_v42 }
  0xe3   :  { %v114_v45 = vpack.c.bf16 %v112_v44, %v112_v44 }
  0xe5   :  { %282 = vmatprep.mubr.bf16.mxu1 %v114_v45 }
  0xe6   :  { %283 = vmatmul.mubr.bf16.vlgmr.msra.gmra.mrb[0].mxu1 %v113_v46 }
 0x1b9   :  { %v466_v49 = vpop.f32.mrb[0].mxu1 }
 0x1ba   :  { %v467_v51 = vpop.f32.mrb[1].mxu1 }
 0x1bb   :  { %v468_v52 = vadd.f32 %v467_v51, %v466_v49  ;;  %v469_v53 = vpop.f32.mrb[2].mxu1 }
 0x1bc   :  { %v470_v54 = vpop.f32.mrb[3].mxu1 }
 0x1bd   :  { %v285_v55 = vadd.f32 %v468_v52, %v424_v50 }
 0x1bf   :  { %v290_v56 = vmax.f32 %v285_v55, 0.0 }
 0x1c1   :  { %v291_v57 = vpack.c.bf16 %v290_v56, %v290_v56 }
 0x1c3   :  { %498 = vmatmul.mubr.bf16.vlgmr.msra.gmra.mrb[4].mxu0 %v291_v57 }
 0x296   :  { %v397_v59 = vpop.f32.mrb[4].mxu0 }
 0x297   :  { %v398_v60 = vadd.f32 %v441_v58, %v397_v59  ;;  %v499_v61 = vpop.f32.mrb[5].mxu0 }
 0x298   :  { %v400_v62 = vpop.f32.mrb[6].mxu0 }
 0x299   :  { %v500_v63 = vpop.f32.mrb[7].mxu0  ;;  %404 = vst.msk [vmem:[#allocation2] sm:$0xff] %vm403_vm2, %v398_v60 }
 0x29a   :  { %546 = shalt.err (!%p543_p4)
}
 0x29b   :  { %s547_s6 = scalar_lea.hbm %s718_s7, 128 }
 0x29c   :  { %p548_p5 = scmp.ne.s32.totalorder %s718_s7, %s547_s6  ;;  %p551_p6 = scmp.lt.u32.totalorder %s547_s6, %s718_s7 }
 0x29e   :  { %p553_p7 = pnand %p551_p6, %p548_p5 }
 0x2a0   :  { %556 = shalt.err (!%p553_p7)
}
 0x2a1   :  { %414 = dma.vmem_to_hbm [thread:$0]  %s412_s13, 128, %s718_s7, [#allocation3]  }
 0x2a2   :  { %557 = dma.done.wait [#allocation3], 128  }
 0x2a3   :  { %558 = vsyncadd [#allocation3], 4294967168 }
 0x2a4   :  { %418 = vsyncpa [#allocation3], 1 }

</bundles_post_ra>
